<compile_context>
chip_gen: v7x
topology: tpu7x:2x2x1
jax: 0.10.0
libtpu: 0.0.40
codegen_flags: <defaults>
</compile_context>

<pallas_src>
import functools

import numpy as np
import jax
import jax.numpy as jnp
from jax.experimental import pallas as pl
from jax.experimental.pallas import tpu as pltpu


# ----------------------------------------------------------------------------
# MADE mask construction (mirror of CMADE.initialise_masks with
# natural_ordering=True, num_masks=1). Pure numpy glue, deterministic.
# ----------------------------------------------------------------------------
def build_made_masks(cond_dim, data_dim, hidden_sizes, out_features, seed=0):
    rng = np.random.default_rng(seed)
    L = len(hidden_sizes)
    degrees = {}
    degrees[-1] = np.concatenate(
        [np.zeros(cond_dim, dtype=np.int64), np.arange(data_dim, dtype=np.int64)]
    )
    for l in range(L):
        if data_dim - 1 == 0:
            degrees[l] = np.zeros(hidden_sizes[l], dtype=np.int64)
        else:
            low = int(degrees[l - 1].min())
            degrees[l] = rng.integers(low, data_dim - 1, size=hidden_sizes[l])
    masks = []
    for l in range(L):
        masks.append(
            (degrees[l - 1][:, None] <= degrees[l][None, :]).astype(np.float32)
        )
    last = (degrees[L - 1][:, None] < degrees[-1][-data_dim:][None, :]).astype(
        np.float32
    )
    if out_features > data_dim:
        k = out_features // data_dim
        last = np.concatenate([last] * k, axis=-1)
    masks.append(last)
    return masks  # masks[i] has shape (in_i, out_i)


# ----------------------------------------------------------------------------
# Parameter init (deterministic, nn.Linear-style uniform) + packing
# ----------------------------------------------------------------------------
def init_params(key, cond_dim, data_dim, hidden_width, depth, dtype=jnp.float32):
    out_features = 2 * data_dim
    hs = [cond_dim + data_dim] + [hidden_width] * depth + [out_features]
    masks = build_made_masks(cond_dim, data_dim, [hidden_width] * depth, out_features)
    params = []
    for i, (h0, h1) in enumerate(zip(hs, hs[1:])):
        key, kw, kb = jax.random.split(key, 3)
        bound = 1.0 / np.sqrt(h0)
        w = jax.random.uniform(kw, (h1, h0), dtype, -bound, bound)  # (out, in) like torch
        b = jax.random.uniform(kb, (h1,), dtype, -bound, bound)
        mask = jnp.asarray(masks[i], dtype)  # (in, out)
        w_eff = w.T * mask  # effective masked weight, (in, out)
        params.append((w_eff, b.reshape(1, h1)))
    return params


def pack_params(params):
    """Pack per-layer (w_eff, b) into consolidated kernel inputs.

    Returns (depth, w0, wh, wl, b2) where
      w0: (cond+D, H)     full first-layer masked weight (layer 0 stays fused),
      wh: (depth-1, H, H) stacked hidden-layer weights (or None if depth == 1),
      wl: (H, 2*D)        last-layer masked weight,
      b2: (depth+1, Wb)   lane-0-aligned bias rows, Wb = max(H, 2*D), zero padded.
    """
    depth = len(params) - 1
    w0 = params[0][0]
    hidden_ws = [w for (w, _) in params[1:-1]]
    wh = jnp.stack(hidden_ws, axis=0) if hidden_ws else None
    wl = params[-1][0]
    H = w0.shape[-1]
    out_f = wl.shape[-1]
    wb = max(H, out_f)
    rows = []
    for (_, b) in params:
        rows.append(jnp.pad(b, ((0, 0), (0, wb - b.shape[-1]))))
    b2 = jnp.concatenate(rows, axis=0)  # (depth+1, Wb), each bias starts at lane 0
    return depth, w0, wh, wl, b2


# ----------------------------------------------------------------------------
# Generation-aware batch-tile selection.
# ----------------------------------------------------------------------------
def _tensorcores_per_chip():
    """Best effort: v7x exposes 2 TensorCores per chip; v5e/v6e have 1."""
    try:
        kind = jax.devices()[0].device_kind.lower()
    except Exception:
        return 1
    return 2 if "v7" in kind else 1


def _pick_batch_tile(B, block_b):
    n_tc = _tensorcores_per_chip()
    if n_tc > 1:
        # Keep >= n_tc grid steps so ("parallel",) can shard batch tiles across
        # TensorCores on v7x; costs nothing on single-TC parts.
        per_core = -(-B // n_tc)                      # cdiv
        per_core = max(8, ((per_core + 7) // 8) * 8)  # sublane-aligned
        block_b = min(block_b, per_core)
    tb = B if B <= block_b else block_b
    if tb < B:
        tb = max(8, (tb // 8) * 8)  # tiled blocks need a multiple-of-8 sublane dim
    return tb


# ----------------------------------------------------------------------------
# Pallas kernel: full MADE MLP chain + affine flow transform + log-det.
# One grid step processes a batch tile of TB rows; weights/biases are
# VMEM-resident (constant block index) across the grid.
# ----------------------------------------------------------------------------
def maf_kernel(depth, hidden, data_dim, cx_ref, x_ref, w0_ref, *refs):
    if depth > 1:
        wh_ref, wl_ref, b_ref, out_ref = refs
    else:
        wh_ref = None
        wl_ref, b_ref, out_ref = refs

    cx = cx_ref[...]                 # (TB, cond + D)   pre-concatenated [c | x]
    x = x_ref[...]                   # (TB, D)
    b = b_ref[...]                   # (depth+1, Wb), every row lane-0 aligned

    # layer 0: single fused matmul against the full masked weight
    h = jnp.dot(cx, w0_ref[...], preferred_element_type=jnp.float32) + b[0:1, :hidden]
    h = jnp.maximum(h, 0.0)

    # hidden layers 1..depth-1 (static unroll for LLO scheduler visibility)
    for l in range(depth - 1):
        h = (jnp.dot(h, wh_ref[l], preferred_element_type=jnp.float32)
             + b[l + 1:l + 2, :hidden])
        h = jnp.maximum(h, 0.0)

    # last layer, no ReLU
    st = (jnp.dot(h, wl_ref[...], preferred_element_type=jnp.float32)
          + b[depth:depth + 1, :2 * data_dim])
    s = st[:, :data_dim]
    T = st[:, data_dim:]
    z = x * jnp.exp(s) + T
    ld = jnp.sum(s, axis=-1, keepdims=True)

    # single consolidated full-tile store: [z | log_det]
    out_ref[...] = jnp.concatenate([z, ld], axis=-1).astype(out_ref.dtype)


def maf_block_forward(c, x, packed, parity=0, block_b=2048):
    """Pallas implementation of MAFBlock.forward(c, x) -> (z, log_det)."""
    depth, w0, wh, wl, b2 = packed
    B, D = x.shape
    cond = c.shape[-1]
    H = w0.shape[-1]
    assert w0.shape[0] == cond + D
    assert b2.shape[0] == depth + 1

    # Layer-0 fusion: one cheap XLA concat outside the kernel -> one MXU matmul
    # inside instead of two on the serial critical path.
    cx = jnp.concatenate([c, x], axis=-1)

    TB = _pick_batch_tile(B, block_b)
    grid = (pl.cdiv(B, TB),)

    in_specs = [
        pl.BlockSpec((TB, cond + D), lambda i: (i, 0)),  # [c|x]  (batch-tiled)
        pl.BlockSpec((TB, D), lambda i: (i, 0)),         # x      (batch-tiled)
        pl.BlockSpec(w0.shape, lambda i: (0, 0)),        # W0     (resident)
    ]
    args = [cx, x, w0]
    if wh is not None:
        in_specs.append(pl.BlockSpec(wh.shape, lambda i: (0, 0, 0)))  # stacked hidden W
        args.append(wh)
    in_specs.extend([
        pl.BlockSpec(wl.shape, lambda i: (0, 0)),        # W_last (resident)
        pl.BlockSpec(b2.shape, lambda i: (0, 0)),        # biases (resident, lane-0 rows)
    ])
    args.extend([wl, b2])

    kernel = functools.partial(maf_kernel, depth, H, D)
    out = pl.pallas_call(
        kernel,
        grid=grid,
        in_specs=in_specs,
        out_specs=pl.BlockSpec((TB, D + 1), lambda i: (i, 0)),
        out_shape=jax.ShapeDtypeStruct((B, D + 1), x.dtype),
        compiler_params=pltpu.CompilerParams(
            dimension_semantics=("parallel",)),
    )(*args)

    z = out[:, :D]
    log_det = out[:, D]
    if parity:
        # Tiny (B, D) lane reverse outside the kernel; log_det is flip-invariant.
        z = jnp.flip(z, axis=-1)
    return z, log_det


# ----------------------------------------------------------------------------
# Pure-JAX reference (mirrors the PyTorch forward) for verification.
# ----------------------------------------------------------------------------
def reference_forward(c, x, params, parity=0):
    D = x.shape[-1]
    h = jnp.concatenate([c, x], axis=-1)
    for i, (w, b) in enumerate(params):
        h = h @ w + b
        if i < len(params) - 1:
            h = jnp.maximum(h, 0.0)
    s, T = h[:, :D], h[:, D:]
    z = x * jnp.exp(s) + T
    if parity:
        z = jnp.flip(z, axis=-1)
    return z, jnp.sum(s, axis=-1)


if __name__ == "__main__":
    # Small shapes consistent with MAFBlock defaults.
    cond_dim = 6
    data_dim = 4
    hidden_width = 24
    depth = 4
    B = 8

    key = jax.random.PRNGKey(0)
    kp, kc, kx = jax.random.split(key, 3)

    params = init_params(kp, cond_dim, data_dim, hidden_width, depth)
    packed = pack_params(params)

    c = jax.random.normal(kc, (B, cond_dim), jnp.float32)
    x = jax.random.normal(kx, (B, data_dim), jnp.float32)

    # parity=0 (module default) and parity=1 (lane flip of z)
    for parity in (0, 1):
        z, log_det = maf_block_forward(c, x, packed, parity=parity)
        z = jax.block_until_ready(z)
        log_det = jax.block_until_ready(log_det)
        z_ref, ld_ref = reference_forward(c, x, params, parity=parity)
        np.testing.assert_allclose(np.asarray(z), np.asarray(z_ref),
                                   rtol=1e-5, atol=1e-5)
        np.testing.assert_allclose(np.asarray(log_det), np.asarray(ld_ref),
                                   rtol=1e-5, atol=1e-5)

    # Larger batch: default tile (grid=1 on v5e/v6e, split across TCs on v7x)
    # and a forced-tiling run (block_b=256) to exercise the batch grid.
    Bb = 1024
    kc2, kx2 = jax.random.split(jax.random.PRNGKey(1))
    cb = jax.random.normal(kc2, (Bb, cond_dim), jnp.float32)
    xb = jax.random.normal(kx2, (Bb, data_dim), jnp.float32)
    zr, lr = reference_forward(cb, xb, params, parity=0)
    for bb in (2048, 256):
        zb, lb = maf_block_forward(cb, xb, packed, parity=0, block_b=bb)
        zb = jax.block_until_ready(zb)
        lb = jax.block_until_ready(lb)
        np.testing.assert_allclose(np.asarray(zb), np.asarray(zr),
                                   rtol=1e-4, atol=1e-4)
        np.testing.assert_allclose(np.asarray(lb), np.asarray(lr),
                                   rtol=1e-4, atol=1e-4)

    print("KERNEL_OK")
</pallas_src>

<mosaic_0001>
module attributes {stable_mosaic.version = 11 : i64} {
  func.func @maf_kernel(%arg0: i32, %arg1: memref<8x10xf32, #tpu.memory_space<vmem>>, %arg2: memref<8x4xf32, #tpu.memory_space<vmem>>, %arg3: memref<10x24xf32, #tpu.memory_space<vmem>>, %arg4: memref<3x24x24xf32, #tpu.memory_space<vmem>>, %arg5: memref<24x8xf32, #tpu.memory_space<vmem>>, %arg6: memref<5x24xf32, #tpu.memory_space<vmem>>, %arg7: memref<8x5xf32, #tpu.memory_space<vmem>>) attributes {dimension_semantics = [#tpu.dimension_semantics<parallel>], iteration_bounds = array<i64: 1>, scalar_prefetch = 0 : i64, scratch_operands = 0 : i64, tpu.core_type = #tpu.core_type<tc>, window_params = [{transform_indices = @transform_0, window_bounds = array<i64: 8, 10>}, {transform_indices = @transform_1, window_bounds = array<i64: 8, 4>}, {pipeline_mode = #tpu.pipeline_mode<synchronous>, transform_indices = @transform_2, window_bounds = array<i64: 10, 24>}, {pipeline_mode = #tpu.pipeline_mode<synchronous>, transform_indices = @transform_3, window_bounds = array<i64: 3, 24, 24>}, {pipeline_mode = #tpu.pipeline_mode<synchronous>, transform_indices = @transform_4, window_bounds = array<i64: 24, 8>}, {pipeline_mode = #tpu.pipeline_mode<synchronous>, transform_indices = @transform_5, window_bounds = array<i64: 5, 24>}, {transform_indices = @transform_6, window_bounds = array<i64: 8, 5>}]} {
    %c0 = arith.constant 0 : index
    %c0_0 = arith.constant 0 : index
    %0 = vector.load %arg1[%c0, %c0_0] : memref<8x10xf32, #tpu.memory_space<vmem>>, vector<8x10xf32>
    %c0_1 = arith.constant 0 : index
    %c0_2 = arith.constant 0 : index
    %1 = vector.load %arg2[%c0_1, %c0_2] : memref<8x4xf32, #tpu.memory_space<vmem>>, vector<8x4xf32>
    %c0_3 = arith.constant 0 : index
    %c0_4 = arith.constant 0 : index
    %2 = vector.load %arg6[%c0_3, %c0_4] : memref<5x24xf32, #tpu.memory_space<vmem>>, vector<5x24xf32>
    %c0_5 = arith.constant 0 : index
    %c0_6 = arith.constant 0 : index
    %3 = vector.load %arg3[%c0_5, %c0_6] : memref<10x24xf32, #tpu.memory_space<vmem>>, vector<10x24xf32>
    %cst = arith.constant dense<0.000000e+00> : vector<8x24xf32>
    %4 = tpu.matmul %0, %3, %cst {dimension_numbers = #tpu.dot_dimension_numbers<[1], [0], [0], [1], [0, 0, 1, 1], [], []>} : vector<8x10xf32>, vector<10x24xf32>, vector<8x24xf32> -> vector<8x24xf32>
    %5 = vector.extract_strided_slice %2 {offsets = [0, 0], sizes = [1, 24], strides = [1, 1]} : vector<5x24xf32> to vector<1x24xf32>
    %6 = vector.broadcast %5 : vector<1x24xf32> to vector<8x24xf32>
    %7 = arith.addf %4, %6 : vector<8x24xf32>
    %cst_7 = arith.constant 0.000000e+00 : f32
    %8 = vector.broadcast %cst_7 : f32 to vector<8x24xf32>
    %9 = arith.maximumf %7, %8 : vector<8x24xf32>
    %c0_8 = arith.constant 0 : index
    %c0_9 = arith.constant 0 : index
    %c0_10 = arith.constant 0 : index
    %10 = vector.load %arg4[%c0_8, %c0_9, %c0_10] : memref<3x24x24xf32, #tpu.memory_space<vmem>>, vector<1x24x24xf32>
    %11 = vector.shape_cast %10 : vector<1x24x24xf32> to vector<24x24xf32>
    %cst_11 = arith.constant dense<0.000000e+00> : vector<8x24xf32>
    %12 = tpu.matmul %9, %11, %cst_11 {dimension_numbers = #tpu.dot_dimension_numbers<[1], [0], [0], [1], [0, 0, 1, 1], [], []>} : vector<8x24xf32>, vector<24x24xf32>, vector<8x24xf32> -> vector<8x24xf32>
    %13 = vector.extract_strided_slice %2 {offsets = [1, 0], sizes = [1, 24], strides = [1, 1]} : vector<5x24xf32> to vector<1x24xf32>
    %14 = vector.broadcast %13 : vector<1x24xf32> to vector<8x24xf32>
    %15 = arith.addf %12, %14 : vector<8x24xf32>
    %cst_12 = arith.constant 0.000000e+00 : f32
    %16 = vector.broadcast %cst_12 : f32 to vector<8x24xf32>
    %17 = arith.maximumf %15, %16 : vector<8x24xf32>
    %c1 = arith.constant 1 : index
    %c0_13 = arith.constant 0 : index
    %c0_14 = arith.constant 0 : index
    %18 = vector.load %arg4[%c1, %c0_13, %c0_14] : memref<3x24x24xf32, #tpu.memory_space<vmem>>, vector<1x24x24xf32>
    %19 = vector.shape_cast %18 : vector<1x24x24xf32> to vector<24x24xf32>
    %cst_15 = arith.constant dense<0.000000e+00> : vector<8x24xf32>
    %20 = tpu.matmul %17, %19, %cst_15 {dimension_numbers = #tpu.dot_dimension_numbers<[1], [0], [0], [1], [0, 0, 1, 1], [], []>} : vector<8x24xf32>, vector<24x24xf32>, vector<8x24xf32> -> vector<8x24xf32>
    %21 = vector.extract_strided_slice %2 {offsets = [2, 0], sizes = [1, 24], strides = [1, 1]} : vector<5x24xf32> to vector<1x24xf32>
    %22 = vector.broadcast %21 : vector<1x24xf32> to vector<8x24xf32>
    %23 = arith.addf %20, %22 : vector<8x24xf32>
    %cst_16 = arith.constant 0.000000e+00 : f32
    %24 = vector.broadcast %cst_16 : f32 to vector<8x24xf32>
    %25 = arith.maximumf %23, %24 : vector<8x24xf32>
    %c2 = arith.constant 2 : index
    %c0_17 = arith.constant 0 : index
    %c0_18 = arith.constant 0 : index
    %26 = vector.load %arg4[%c2, %c0_17, %c0_18] : memref<3x24x24xf32, #tpu.memory_space<vmem>>, vector<1x24x24xf32>
    %27 = vector.shape_cast %26 : vector<1x24x24xf32> to vector<24x24xf32>
    %cst_19 = arith.constant dense<0.000000e+00> : vector<8x24xf32>
    %28 = tpu.matmul %25, %27, %cst_19 {dimension_numbers = #tpu.dot_dimension_numbers<[1], [0], [0], [1], [0, 0, 1, 1], [], []>} : vector<8x24xf32>, vector<24x24xf32>, vector<8x24xf32> -> vector<8x24xf32>
    %29 = vector.extract_strided_slice %2 {offsets = [3, 0], sizes = [1, 24], strides = [1, 1]} : vector<5x24xf32> to vector<1x24xf32>
    %30 = vector.broadcast %29 : vector<1x24xf32> to vector<8x24xf32>
    %31 = arith.addf %28, %30 : vector<8x24xf32>
    %cst_20 = arith.constant 0.000000e+00 : f32
    %32 = vector.broadcast %cst_20 : f32 to vector<8x24xf32>
    %33 = arith.maximumf %31, %32 : vector<8x24xf32>
    %c0_21 = arith.constant 0 : index
    %c0_22 = arith.constant 0 : index
    %34 = vector.load %arg5[%c0_21, %c0_22] : memref<24x8xf32, #tpu.memory_space<vmem>>, vector<24x8xf32>
    %cst_23 = arith.constant dense<0.000000e+00> : vector<8x8xf32>
    %35 = tpu.matmul %33, %34, %cst_23 {dimension_numbers = #tpu.dot_dimension_numbers<[1], [0], [0], [1], [0, 0, 1, 1], [], []>} : vector<8x24xf32>, vector<24x8xf32>, vector<8x8xf32> -> vector<8x8xf32>
    %36 = vector.extract_strided_slice %2 {offsets = [4, 0], sizes = [1, 8], strides = [1, 1]} : vector<5x24xf32> to vector<1x8xf32>
    %37 = vector.broadcast %36 : vector<1x8xf32> to vector<8x8xf32>
    %38 = arith.addf %35, %37 : vector<8x8xf32>
    %39 = vector.extract_strided_slice %38 {offsets = [0, 0], sizes = [8, 4], strides = [1, 1]} : vector<8x8xf32> to vector<8x4xf32>
    %40 = vector.extract_strided_slice %38 {offsets = [0, 4], sizes = [8, 4], strides = [1, 1]} : vector<8x8xf32> to vector<8x4xf32>
    %41 = math.exp %39 : vector<8x4xf32>
    %42 = arith.mulf %1, %41 : vector<8x4xf32>
    %43 = arith.addf %42, %40 : vector<8x4xf32>
    %cst_24 = arith.constant dense<0.000000e+00> : vector<8xf32>
    %44 = vector.multi_reduction <add>, %39, %cst_24 [1] : vector<8x4xf32> to vector<8xf32>
    %45 = vector.shape_cast %44 : vector<8xf32> to vector<8x1xf32>
    %46 = tpu.concatenate %43, %45 in 1 : vector<8x4xf32>, vector<8x1xf32> -> vector<8x5xf32>
    %c0_25 = arith.constant 0 : index
    %c0_26 = arith.constant 0 : index
    %47 = vector.load %arg7[%c0_25, %c0_26] : memref<8x5xf32, #tpu.memory_space<vmem>>, vector<8x5xf32>
    tpu.vector_store %arg7[%c0_25, %c0_26], %46 {strides = array<i32>} : memref<8x5xf32, #tpu.memory_space<vmem>>, vector<8x5xf32>,
    return
  }
  func.func @transform_0(%arg0: i32) -> (i32, i32) {
    %c0_i32 = arith.constant 0 : i32
    %c0_i32_0 = arith.constant 0 : i32
    return %arg0, %c0_i32 : i32, i32
  }
  func.func @transform_1(%arg0: i32) -> (i32, i32) {
    %c0_i32 = arith.constant 0 : i32
    %c0_i32_0 = arith.constant 0 : i32
    return %arg0, %c0_i32 : i32, i32
  }
  func.func @transform_2(%arg0: i32) -> (i32, i32) {
    %c0_i32 = arith.constant 0 : i32
    %c0_i32_0 = arith.constant 0 : i32
    %c0_i32_1 = arith.constant 0 : i32
    return %c0_i32, %c0_i32_0 : i32, i32
  }
  func.func @transform_3(%arg0: i32) -> (i32, i32, i32) {
    %c0_i32 = arith.constant 0 : i32
    %c0_i32_0 = arith.constant 0 : i32
    %c0_i32_1 = arith.constant 0 : i32
    %c0_i32_2 = arith.constant 0 : i32
    return %c0_i32, %c0_i32_0, %c0_i32_1 : i32, i32, i32
  }
  func.func @transform_4(%arg0: i32) -> (i32, i32) {
    %c0_i32 = arith.constant 0 : i32
    %c0_i32_0 = arith.constant 0 : i32
    %c0_i32_1 = arith.constant 0 : i32
    return %c0_i32, %c0_i32_0 : i32, i32
  }
  func.func @transform_5(%arg0: i32) -> (i32, i32) {
    %c0_i32 = arith.constant 0 : i32
    %c0_i32_0 = arith.constant 0 : i32
    %c0_i32_1 = arith.constant 0 : i32
    return %c0_i32, %c0_i32_0 : i32, i32
  }
  func.func @transform_6(%arg0: i32) -> (i32, i32) {
    %c0_i32 = arith.constant 0 : i32
    %c0_i32_0 = arith.constant 0 : i32
    return %arg0, %c0_i32 : i32, i32
  }
}

</mosaic_0001>

<bundles_post_ra>
// kernel: tpu_custom_call.1
= control target key start
LH: loop header
LB: loop body
LE: loop exit
PB: predicated region body
PF: predicated region fallthrough
CT: control target
= control target key end

     0   :  { %11 = vsyncpa [#allocation3], 0  ;;  %s728_s0 = inlined_call_operand.vmem [shape: f32[8,10], index: 0, kind: input, shape index: {}]   ;;  %s729_s1 = inlined_call_operand.vmem [shape: f32[8,4], index: 1, kind: input, shape index: {}]   ;;  %s730_s2 = inlined_call_operand.vmem [shape: f32[10,24], index: 2, kind: input, shape index: {}]   ;;  %s731_s3 = inlined_call_operand.hbm [shape: f32[3,24,24], index: 3, kind: input, shape index: {}]   ;;  %s732_s4 = inlined_call_operand.vmem [shape: f32[24,8], index: 4, kind: input, shape index: {}]   ;;  %s733_s5 = inlined_call_operand.vmem [shape: f32[5,24], index: 5, kind: input, shape index: {}]   ;;  %s734_s6 = inlined_call_operand.hbm [shape: f32[8,5], index: 6, kind: output, shape index: {}]  }
   0x1   :  { %12 = vsyncpa [#allocation4], 0  ;;  %s625_s21 = smov [#allocation2]   ;;  %s577_s25 = scalar_lea.hbm %s731_s3, 1152 }
   0x2   :  { %s24_s22 = sshll.u32 %s625_s21, 4  ;;  %p578_p0 = scmp.ne.s32.totalorder %s731_s3, %s577_s25  ;;  %s25_s22 = int_to_ptr.vmem [resolvable:$true] %s24_s22 }
   0x3   :  { %p581_p1 = scmp.lt.u32.totalorder %s577_s25, %s731_s3 }
   0x5   :  { %p583_p2 = pnand %p581_p1, %p578_p0 }
   0x7   :  { %586 = shalt.err (!%p583_p2)
}
   0x8   :  { %s587_s30 = scalar_lea.vmem %s25_s22, 1152  ;;  %p592_p4 = scmp.lt.s32.totalorder %s25_s22, %s25_s22 }
   0x9   :  { %p588_p3 = scmp.ne.s32.totalorder %s25_s22, %s587_s30  ;;  %p593_p5 = scmp.lt.s32.totalorder %s587_s30, %s587_s30 }
   0xb   :  { %p594_p6 = por %p593_p5, %p592_p4 }
   0xd   :  { %p595_p7 = pnand %p594_p6, %p588_p3 }
   0xf   :  { %598 = shalt.err (!%p595_p7)
}
  0x10   :  { %s626_s7 = smov 128   ;;  %s627_s8 = smov 8  }
  0x11   :  { %30 = dma.hbm_to_vmem [thread:$0]  %s731_s3, 1152, %s25_s22, [#allocation3], %s626_s7, %s626_s7, %s627_s8  }
  0x12   :  { %621 = dma.done.wait [#allocation3], 1152  }
  0x13   :  { %622 = vsyncadd [#allocation3], 4294966144  ;;  %v628_v0 = vmov 0.0|0.0   ;;  %vm629_vm0 = vmmov 0   ;;  %v630_v1 = vmov 0.0   ;;  %vm51_vm1 = vcmask 1041408  }
  0x14   :  { %550 = vmatprep.subr.bf16.mxu0 %v628_v0  ;;  %554 = vmatprep.subr.bf16.mxu1 %v628_v0  ;;  %v41_v2 = vld [vmem:[%s730_s2] sm:$0xff]  ;;  %v42_v3 = vld [vmem:[%s730_s2 + $0x8] sm:$0x3]  ;;  %vm631_vm2 = vmmov 1   ;;  %vm47_vm4 = vcmask 80896   ;;  %v128_v9 = vld [vmem:[#allocation2 + $0x10] sm:$0xff]  ;;  %v43_v13 = vlaneseq }
  0x15   :  { %511 = vmatprep.mubr.msk.f32.mxu0 %vm629_vm0, %v630_v1  ;;  %520 = vmatprep.mubr.msk.f32.mxu1 %vm629_vm0, %v630_v1  ;;  %vm552_vm3 = vmpackc.low %vm51_vm1, %vm631_vm2  ;;  %v551_v4 = vpack.c.bf16 %v42_v3, %v41_v2  ;;  %v38_v5 = vld [vmem:[%s728_s0] sm:$0xff]  ;;  %v127_v7 = vld [vmem:[#allocation2 + $0x8] sm:$0xff]  ;;  %vm133_vm5 = vcmask 195584   ;;  %vm460_vm6 = vcmask 31744   ;;  %s632_s21 = smov 124   ;;  %s633_s23 = smov [#allocation5]  }
  0x16   :  { %v126_v6 = vld [vmem:[#allocation2] sm:$0xff]  ;;  %v209_v10 = vld [vmem:[#allocation2 + $0x18] sm:$0xff]  ;;  %v44_v14 = vshrl.u32 %v43_v13, 7  ;;  %v211_v22 = vld [vmem:[#allocation2 + $0x28] sm:$0xff]  ;;  %s473_s24 = sshll.u32 %s633_s23, 4  ;;  %vm465_vm7 = vcmask 39936   ;;  %s474_s24 = int_to_ptr.vmem [resolvable:$true] %s473_s24 }
  0x17   :  { %553 = vmatpush3.bf16.msk.msra.mxu0 %vm552_vm3, %v551_v4  ;;  %v555_v8 = vpack.c.bf16 %v127_v7, %v126_v6  ;;  %v210_v11 = vld [vmem:[#allocation2 + $0x20] sm:$0xff]  ;;  %v291_v23 = vld [vmem:[#allocation2 + $0x30] sm:$0xff]  ;;  %v292_v24 = vld [vmem:[#allocation2 + $0x38] sm:$0xff]  ;;  %s599_s25 = scalar_lea.vmem %s474_s24, 128  ;;  %p604_p9 = scmp.lt.s32.totalorder %s474_s24, %s474_s24 }
  0x18   :  { %557 = vmatprep.subr.bf16.mxu0 %v628_v0  ;;  %v558_v12 = vpack.c.bf16 %v210_v11, %v209_v10  ;;  %v45_v15 = vsub.s32 0, %v44_v14  ;;  %v40_v16 = vld [vmem:[%s733_s5] sm:$0x1f]  ;;  %v561_v25 = vpack.c.bf16 %v292_v24, %v291_v23  ;;  %v131_v26 = vsub.s32 1, %v44_v14  ;;  %v373_v34 = vld [vmem:[%s732_s4 + $0x8] sm:$0xff]  ;;  %v374_v42 = vld [vmem:[%s732_s4 + $0x10] sm:$0xff]  ;;  %p600_p8 = scmp.ne.s32.totalorder %s474_s24, %s599_s25  ;;  %p605_p10 = scmp.lt.s32.totalorder %s599_s25, %s599_s25 }
  0x19   :  { %556 = vmatpush3.bf16.msra.mxu1 %v555_v8  ;;  %v293_v32 = vld [vmem:[#allocation2 + $0x40] sm:$0xff]  ;;  %v214_v36 = vsub.s32 2, %v44_v14  ;;  %v296_v43 = vsub.s32 3, %v44_v14  ;;  %v377_v49 = vsub.s32 4, %v44_v14 }
  0x1a   :  { %512 = vmatmul.mubr.msk.f32.vlgmr.msra.gmra.mrb[0].mxu0 %vm47_vm4, %v38_v5  ;;  %518 = vmatprep.subr.mxu1 %v630_v1  ;;  %v46_v17 = vrot.slane %v40_v16, %v45_v15  ;;  %v132_v27 = vrot.slane %v40_v16, %v131_v26  ;;  %v372_v33 = vld [vmem:[%s732_s4] sm:$0xff]  ;;  %p606_p11 = por %p605_p10, %p604_p9 }
  0x1b   :  { %529 = vmatprep.mubr.msk.f32.mxu0 %vm629_vm0, %v630_v1  ;;  %559 = vmatpush3.bf16.msra.mxu0 %v558_v12  ;;  %v564_v35 = vpack.c.bf16 %v373_v34, %v372_v33  ;;  %v215_v37 = vrot.slane %v40_v16, %v214_v36  ;;  %v297_v44 = vrot.slane %v40_v16, %v296_v43  ;;  %v39_v58 = vld [vmem:[%s729_s1] sm:$0xff] }
  0x1c   :  { %527 = vmatprep.subr.mxu0 %v630_v1  ;;  %v378_v50 = vrot.slane %v40_v16, %v377_v49  ;;  %p607_p12 = pnand %p606_p11, %p600_p8 }
  0x1d   :  { %519 = vmatpush3.msra.mxu1 %v128_v9 }
  0x1e   :  { %560 = vmatprep.subr.bf16.mxu1 %v628_v0 }
  0x1f   :  { %528 = vmatpush3.msra.mxu0 %v211_v22 }
  0x20   :  { %563 = vmatprep.subr.bf16.mxu0 %v628_v0 }
  0xed   :  { %v121_v18 = vpop.f32.mrb[0].mxu0 }
  0xee   :  { %v122_v19 = vadd.f32 %v121_v18, %v46_v17  ;;  %v513_v20 = vpop.f32.mrb[1].mxu0 }
  0xf0   :  { %v125_v21 = vmax.f32 %v122_v19, 0.0 }
  0xf2   :  { %521 = vmatmul.mubr.msk.f32.vlgmr.msra.gmra.mrb[0].mxu1 %vm133_vm5, %v125_v21 }
  0xf3   :  { %538 = vmatprep.mubr.msk.f32.mxu1 %vm629_vm0, %v630_v1  ;;  %562 = vmatpush3.bf16.msra.mxu1 %v561_v25 }
  0xf4   :  { %536 = vmatprep.subr.mxu1 %v630_v1 }
  0xf7   :  { %537 = vmatpush3.msra.mxu1 %v293_v32 }
 0x1c5   :  { %v203_v28 = vpop.f32.mrb[0].mxu1 }
 0x1c6   :  { %v204_v29 = vadd.f32 %v203_v28, %v132_v27  ;;  %v522_v30 = vpop.f32.mrb[1].mxu1 }
 0x1c8   :  { %v207_v31 = vmax.f32 %v204_v29, 0.0 }
 0x1ca   :  { %530 = vmatmul.mubr.msk.f32.vlgmr.msra.gmra.mrb[2].mxu0 %vm133_vm5, %v207_v31 }
 0x1cb   :  { %547 = vmatprep.mubr.msk.f32.mxu0 %vm629_vm0, %v630_v1  ;;  %565 = vmatpush3.bf16.msra.mxu0 %v564_v35 }
 0x1cc   :  { %545 = vmatprep.subr.mxu0 %v630_v1 }
 0x1cf   :  { %546 = vmatpush3.msra.mxu0 %v374_v42 }
 0x29d   :  { %v285_v38 = vpop.f32.mrb[2].mxu0 }
 0x29e   :  { %v286_v39 = vadd.f32 %v285_v38, %v215_v37  ;;  %v531_v40 = vpop.f32.mrb[3].mxu0 }
 0x2a0   :  { %v289_v41 = vmax.f32 %v286_v39, 0.0 }
 0x2a2   :  { %539 = vmatmul.mubr.msk.f32.vlgmr.msra.gmra.mrb[2].mxu1 %vm133_vm5, %v289_v41 }
 0x375   :  { %v367_v45 = vpop.f32.mrb[2].mxu1 }
 0x376   :  { %v368_v46 = vadd.f32 %v367_v45, %v297_v44  ;;  %v540_v47 = vpop.f32.mrb[3].mxu1 }
 0x378   :  { %v371_v48 = vmax.f32 %v368_v46, 0.0 }
 0x37a   :  { %548 = vmatmul.mubr.msk.f32.vlgmr.msra.gmra.mrb[4].mxu0 %vm133_vm5, %v371_v48 }
 0x44d   :  { %v448_v51 = vpop.f32.mrb[4].mxu0 }
 0x44e   :  { %v449_v52 = vadd.f32 %v448_v51, %v378_v50  ;;  %v549_v53 = vpop.f32.mrb[5].mxu0 }
 0x450   :  { %v461_v54 = vsel %vm460_vm6, %v449_v52, 0.0  ;;  %v452_v55 = vmul.f32 1.442695, %v449_v52 }
 0x451   :  { %462 = vadd.xlane.f32.xlu0 %v461_v54 }
 0x452   :  { %575 = vpow2.f32 %v452_v55 }
 0x45c   :  { %v576_v56 = vpop.eup %575 }
 0x45d   :  { %v454_v59 = vmul.f32 %v576_v56, %v39_v58 }
 0x467   :  { %456 = vrot.lane.b32.xlu0 %v449_v52, %s632_s21 }
 0x4de   :  { %v463_v57 = vpop.xlane.xlu0 %462 }
 0x4e2   :  { %v457_v60 = vpop.permute.xlu0 %456 }
 0x4e3   :  { %v459_v61 = vadd.f32 %v457_v60, %v454_v59 }
 0x4e5   :  { %v464_v62 = vsel %vm460_vm6, %v459_v61, %v463_v57 }
 0x4e6   :  { %466 = vst.msk [vmem:[#allocation5] sm:$0xff] %vm465_vm7, %v464_v62 }
 0x4e7   :  { %610 = shalt.err (!%p607_p12)
}
 0x4e8   :  { %s611_s1 = scalar_lea.hbm %s734_s6, 128 }
 0x4e9   :  { %p612_p13 = scmp.ne.s32.totalorder %s734_s6, %s611_s1  ;;  %p615_p0 = scmp.lt.u32.totalorder %s611_s1, %s734_s6 }
 0x4eb   :  { %p617_p1 = pnand %p615_p0, %p612_p13 }
 0x4ed   :  { %620 = shalt.err (!%p617_p1)
}
 0x4ee   :  { %476 = dma.vmem_to_hbm [thread:$0]  %s474_s24, 128, %s734_s6, [#allocation4]  }
 0x4ef   :  { %623 = dma.done.wait [#allocation4], 128  }
 0x4f0   :  { %624 = vsyncadd [#allocation4], 4294967168 }
 0x4f1   :  { %480 = vsyncpa [#allocation3], 1 }
 0x4f2   :  { %481 = vsyncpa [#allocation4], 1 }

</bundles_post_ra>
